<compile_context>
chip_gen: v7x
topology: tpu7x:2x2x1
jax: 0.10.0
libtpu: 0.0.40
codegen_flags: <defaults>
</compile_context>

<pallas_src>
import math
import functools

import jax
import jax.numpy as jnp
from jax import lax
from jax.experimental import pallas as pl
from jax.experimental.pallas import tpu as pltpu


def _round_up(n, m):
    return ((n + m - 1) // m) * m


def _proxygml_kernel(x_ref, prox_ref, tgt_ref, inst_ref, onehot_ref, out_ref,
                     scores_ref, mask_ref, *, topk, weight_lambda, cn, cn_sub):
    x = x_ref[...]            # (B, Dp)  f32
    P = prox_ref[...]         # (Dp, CNp) f32
    tgt = tgt_ref[...]        # (B, 1)   int32
    inst = inst_ref[...]      # (1, CNp) int32, -1 on padded proxy columns
    Y = onehot_ref[...]       # (CNp, C) f32, zero rows for padded proxies

    B = x.shape[0]
    CNp = P.shape[1]
    C = Y.shape[1]

    # centers = F.normalize(Proxies, p=2, dim=0): rsqrt-multiply (EUP slot).
    inv_norm = lax.rsqrt(jnp.maximum(jnp.sum(P * P, axis=0, keepdims=True),
                                     1e-24))
    centers = P * inv_norm                                          # (Dp, CNp)

    # similarity = input @ centers (padded rows/cols contribute exact zeros).
    sim = jnp.dot(x, centers, preferred_element_type=jnp.float32)   # (B, CNp)

    col_valid = inst >= 0                                           # (1, CNp)
    pos_mask = (tgt == inst).astype(jnp.float32)                    # (B, CNp)

    NEG = -1e30
    scores = jnp.where(col_valid, sim + 100.0 * pos_mask, NEG)      # (B, CNp)

    # ---- top-k selection mask via per-row rank ------------------------------
    # mask[b,i] = 1  iff  rank[b,i] < topk, with
    #   rank[b,i] = #{j < cn_sub : s[b,j] > s[b,i]}
    #             + #{j < i      : s[b,j] == s[b,i]}
    # (exactly `topk` ones per valid row; lowest-index tie-break matches
    #  torch.topk / lax.top_k; padded proxy columns never influence the
    #  result because their similarity and one-hot rows are exact zeros).
    scores_ref[...] = scores
    scores_t = jnp.transpose(scores)          # (CNp, B), exact XLU transpose
    st_sub = scores_t[:cn_sub, :]             # (cn_sub, B): valid-j rows only

    jj = lax.broadcasted_iota(jnp.int32, (cn_sub, CNp), 0)   # j along sublanes
    ii = lax.broadcasted_iota(jnp.int32, (cn_sub, CNp), 1)   # i along lanes
    tie_lower = jj < ii                                      # hoisted invariant
    b_lane = lax.broadcasted_iota(jnp.int32, (cn_sub, B), 1)

    @pl.loop(0, B)
    def _(b):
        # Row b of the scores in lane layout (varies along i).
        row = scores_ref[pl.ds(b, 1), :]                       # (1, CNp)
        s_i = jnp.broadcast_to(row, (cn_sub, CNp))
        # Column b of the transposed scores in sublane layout (varies along j),
        # selected with an exact masked lane-reduce (no dynamic lane slicing).
        col = jnp.sum(jnp.where(b_lane == b, st_sub, 0.0),
                      axis=1, keepdims=True)                   # (cn_sub, 1)
        s_j = jnp.broadcast_to(col, (cn_sub, CNp))
        beats = (s_j > s_i) | ((s_j == s_i) & tie_lower)       # j==i -> 0
        rank = jnp.sum(beats.astype(jnp.float32), axis=0,
                       keepdims=True)                          # (1, CNp)
        mask_ref[pl.ds(b, 1), :] = (rank < float(topk)).astype(jnp.float32)

    mask = mask_ref[...]                                        # (B, CNp)

    # logits = (mask * similarity) @ y_instance_onehot (padded cols stay 0).
    prob_a = mask * sim
    logits = jnp.dot(prob_a, Y, preferred_element_type=jnp.float32)  # (B, C)

    # scale_mask_softmax + NLL, in log-space:
    #   loss_b = log(1e-8 + sum_c exp(logits)*[logits!=0]) - logits[b, t_b]
    # with the reference's -log(1e-20) fallback when the target class logit
    # is exactly zero (no selected proxy).
    lmask = (logits != 0.0).astype(jnp.float32)
    denom = 1e-8 + jnp.sum(jnp.exp(logits) * lmask, axis=1, keepdims=True)
    cls_idx = lax.broadcasted_iota(jnp.int32, (B, C), 1)
    y_tgt = (cls_idx == tgt).astype(jnp.float32)                # (B, C)
    l_t = jnp.sum(logits * y_tgt, axis=1, keepdims=True)        # (B, 1)
    loss_rows = jnp.where(l_t != 0.0, jnp.log(denom) - l_t, -math.log(1e-20))
    loss_cls = jnp.sum(loss_rows) / B

    # Proxy regularizer: cross_entropy(centers.T @ centers @ Y, instance_label),
    # re-associated as centers.T @ (centers @ Y) -> no (CN, CN) intermediate.
    centersY = jnp.dot(centers, Y, preferred_element_type=jnp.float32)  # (Dp, C)
    centers_logits = lax.dot_general(centers, centersY,
                                     (((0,), (0,)), ((), ())),
                                     preferred_element_type=jnp.float32)  # (CNp, C)
    mx = jnp.max(centers_logits, axis=1, keepdims=True)
    lse = jnp.log(jnp.sum(jnp.exp(centers_logits - mx), axis=1,
                          keepdims=True)) + mx                     # (CNp, 1)
    correct = jnp.sum(centers_logits * Y, axis=1, keepdims=True)   # (CNp, 1)
    row_valid = lax.broadcasted_iota(jnp.int32, (CNp, 1), 0) < cn
    reg = jnp.sum(jnp.where(row_valid, lse - correct, 0.0)) / cn

    out_ref[0, 0] = loss_cls + weight_lambda * reg


def proxygml_loss(x, proxies, target, instance_label, y_instance_onehot,
                  *, r=0.4, weight_lambda=0.3):
    B, D = x.shape
    CN = proxies.shape[1]
    topk = math.ceil(r * CN)

    Dp = _round_up(D, 8)        # contraction / sublane dim: 8 is enough
    CNp = _round_up(CN, 128)    # lane dim of sim / scores / mask
    CN_sub = _round_up(CN, 8)   # j-extent of the rank comparison

    x_p = jnp.pad(x.astype(jnp.float32), ((0, 0), (0, Dp - D)))
    prox_p = jnp.pad(proxies.astype(jnp.float32),
                     ((0, Dp - D), (0, CNp - CN)))
    y_p = jnp.pad(y_instance_onehot.astype(jnp.float32),
                  ((0, CNp - CN), (0, 0)))
    inst_p = jnp.pad(instance_label.astype(jnp.int32).reshape(1, CN),
                     ((0, 0), (0, CNp - CN)), constant_values=-1)
    tgt2d = target.reshape(B, 1).astype(jnp.int32)

    kernel = functools.partial(_proxygml_kernel, topk=topk,
                               weight_lambda=weight_lambda,
                               cn=CN, cn_sub=CN_sub)

    vmem = pl.BlockSpec(memory_space=pltpu.MemorySpace.VMEM)
    out = pl.pallas_call(
        kernel,
        out_shape=jax.ShapeDtypeStruct((1, 1), jnp.float32),
        in_specs=[vmem, vmem, vmem, vmem, vmem],
        # Scalar loss goes out through SMEM (no masked (1,1) vector store).
        out_specs=pl.BlockSpec(memory_space=pltpu.MemorySpace.SMEM),
        scratch_shapes=[pltpu.VMEM((B, CNp), jnp.float32),   # scores
                        pltpu.VMEM((B, CNp), jnp.float32)],  # top-k mask
        compiler_params=pltpu.CompilerParams(
            vmem_limit_bytes=4 * 1024 * 1024),
    )(x_p, prox_p, tgt2d, inst_p, y_p)
    return out[0, 0]


def proxygml_loss_ref(x, proxies, target, instance_label, y_instance_onehot,
                      *, r=0.4, weight_lambda=0.3):
    """Pure-JAX reference mirroring the PyTorch forward (highest-precision dots)."""
    CN = proxies.shape[1]
    C = y_instance_onehot.shape[1]
    topk = math.ceil(r * CN)
    hp = lax.Precision.HIGHEST
    centers = proxies / jnp.maximum(
        jnp.sqrt(jnp.sum(proxies ** 2, axis=0, keepdims=True)), 1e-12)
    sim = jnp.matmul(x, centers, precision=hp)
    pos_mask = (target[:, None] == instance_label[None, :]).astype(jnp.float32)
    _, idx = lax.top_k(sim + 100.0 * pos_mask, topk)
    mask = jnp.zeros_like(sim).at[jnp.arange(sim.shape[0])[:, None], idx].set(1.0)
    logits = jnp.matmul(mask * sim, y_instance_onehot, precision=hp)
    logits_mask = 1.0 - (logits == 0.0).astype(jnp.float32)
    e = jnp.exp(logits) * logits_mask
    predict = e / (1e-8 + jnp.sum(e, axis=1, keepdims=True))
    y_tgt = jax.nn.one_hot(target, C, dtype=jnp.float32)
    loss_cls = jnp.mean(jnp.sum(-y_tgt * jnp.log(predict + 1e-20), axis=1))
    centers_logits = jnp.matmul(jnp.matmul(centers.T, centers, precision=hp),
                                y_instance_onehot, precision=hp)
    lse = jax.nn.logsumexp(centers_logits, axis=1)
    correct = jnp.sum(centers_logits * y_instance_onehot, axis=1)
    reg = jnp.mean(lse - correct)
    return loss_cls + weight_lambda * reg


if __name__ == "__main__":
    # Small shapes consistent with the module: nOut=32, nClasses=8, K=3, B=8.
    nOut, nClasses, K, B = 32, 8, 3, 8
    CN = nClasses * K

    key = jax.random.PRNGKey(0)
    k_prox, k_x, k_t = jax.random.split(key, 3)

    # Xavier-normal init of Proxies (dim, C*N): std = gain*sqrt(2/(fan_in+fan_out))
    std = 1.0 * math.sqrt(2.0 / (nOut + CN))
    proxies = jax.random.normal(k_prox, (nOut, CN), jnp.float32) * std

    x = jax.random.normal(k_x, (B, nOut), jnp.float32)
    target = jax.random.randint(k_t, (B,), 0, nClasses, jnp.int32)

    instance_label = jnp.repeat(jnp.arange(nClasses, dtype=jnp.int32), K)   # (CN,)
    y_instance_onehot = jax.nn.one_hot(instance_label, nClasses,
                                       dtype=jnp.float32)                   # (CN, C)

    loss = proxygml_loss(x, proxies, target, instance_label, y_instance_onehot)
    loss = jax.block_until_ready(loss)

    ref = proxygml_loss_ref(x, proxies, target, instance_label, y_instance_onehot)
    # Tightened vs. the previous 2e-3 (exact log-space CE, no approx reciprocal);
    # remaining slack covers MXU f32-emulation and rsqrt-vs-sqrt/div rounding.
    assert jnp.allclose(loss, ref, atol=1e-3, rtol=1e-3), (loss, ref)

    # TODO(synk): `equal_error_rate` and `accuracy` (prec1/eer side outputs) are
    # external, undefined helpers in the original module and are not reproduced.
    print("KERNEL_OK")
</pallas_src>

<mosaic_0001>
module attributes {stable_mosaic.version = 11 : i64} {
  func.func @_proxygml_kernel(%arg0: memref<8x32xf32, #tpu.memory_space<vmem>>, %arg1: memref<32x128xf32, #tpu.memory_space<vmem>>, %arg2: memref<8x1xi32, #tpu.memory_space<vmem>>, %arg3: memref<1x128xi32, #tpu.memory_space<vmem>>, %arg4: memref<128x8xf32, #tpu.memory_space<vmem>>, %arg5: memref<1x1xf32, #tpu.memory_space<smem>>, %arg6: memref<8x128xf32, #tpu.memory_space<vmem>>, %arg7: memref<8x128xf32, #tpu.memory_space<vmem>>) attributes {dimension_semantics = [], scalar_prefetch = 0 : i64, scratch_operands = 2 : i64, tpu.core_type = #tpu.core_type<tc>} {
    %c0 = arith.constant 0 : index
    %c0_0 = arith.constant 0 : index
    %0 = vector.load %arg0[%c0, %c0_0] : memref<8x32xf32, #tpu.memory_space<vmem>>, vector<8x32xf32>
    %c0_1 = arith.constant 0 : index
    %c0_2 = arith.constant 0 : index
    %1 = vector.load %arg1[%c0_1, %c0_2] : memref<32x128xf32, #tpu.memory_space<vmem>>, vector<32x128xf32>
    %c0_3 = arith.constant 0 : index
    %c0_4 = arith.constant 0 : index
    %2 = vector.load %arg2[%c0_3, %c0_4] : memref<8x1xi32, #tpu.memory_space<vmem>>, vector<8x1xi32>
    %c0_5 = arith.constant 0 : index
    %c0_6 = arith.constant 0 : index
    %3 = vector.load %arg3[%c0_5, %c0_6] : memref<1x128xi32, #tpu.memory_space<vmem>>, vector<1x128xi32>
    %c0_7 = arith.constant 0 : index
    %c0_8 = arith.constant 0 : index
    %4 = vector.load %arg4[%c0_7, %c0_8] : memref<128x8xf32, #tpu.memory_space<vmem>>, vector<128x8xf32>
    %5 = arith.mulf %1, %1 : vector<32x128xf32>
    %cst = arith.constant dense<0.000000e+00> : vector<128xf32>
    %6 = vector.multi_reduction <add>, %5, %cst [0] : vector<32x128xf32> to vector<128xf32>
    %7 = vector.shape_cast %6 : vector<128xf32> to vector<1x128xf32>
    %cst_9 = arith.constant 1.000000e-24 : f32
    %8 = vector.broadcast %cst_9 : f32 to vector<1x128xf32>
    %9 = arith.maximumf %7, %8 : vector<1x128xf32>
    %10 = math.rsqrt %9 : vector<1x128xf32>
    %11 = vector.broadcast %10 : vector<1x128xf32> to vector<32x128xf32>
    %12 = arith.mulf %1, %11 : vector<32x128xf32>
    %cst_10 = arith.constant dense<0.000000e+00> : vector<8x128xf32>
    %13 = tpu.matmul %0, %12, %cst_10 {dimension_numbers = #tpu.dot_dimension_numbers<[1], [0], [0], [1], [0, 0, 1, 1], [], []>} : vector<8x32xf32>, vector<32x128xf32>, vector<8x128xf32> -> vector<8x128xf32>
    %c0_i32 = arith.constant 0 : i32
    %14 = vector.broadcast %c0_i32 : i32 to vector<1x128xi32>
    %15 = arith.cmpi sge, %3, %14 : vector<1x128xi32>
    %16 = vector.broadcast %2 : vector<8x1xi32> to vector<8x128xi32>
    %17 = vector.broadcast %3 : vector<1x128xi32> to vector<8x128xi32>
    %18 = arith.cmpi eq, %16, %17 : vector<8x128xi32>
    %19 = arith.extui %18 : vector<8x128xi1> to vector<8x128xi32>
    %20 = arith.sitofp %19 : vector<8x128xi32> to vector<8x128xf32>
    %cst_11 = arith.constant 1.000000e+02 : f32
    %21 = vector.broadcast %cst_11 : f32 to vector<8x128xf32>
    %22 = arith.mulf %21, %20 : vector<8x128xf32>
    %23 = arith.addf %13, %22 : vector<8x128xf32>
    %cst_12 = arith.constant -1.000000e+30 : f32
    %24 = vector.shape_cast %15 : vector<1x128xi1> to vector<1x128xi1>
    %25 = vector.broadcast %24 : vector<1x128xi1> to vector<8x128xi1>
    %26 = vector.broadcast %cst_12 : f32 to vector<8x128xf32>
    %27 = arith.select %25, %23, %26 : vector<8x128xi1>, vector<8x128xf32>
    %c0_13 = arith.constant 0 : index
    %c0_14 = arith.constant 0 : index
    %28 = vector.load %arg6[%c0_13, %c0_14] : memref<8x128xf32, #tpu.memory_space<vmem>>, vector<8x128xf32>
    tpu.vector_store %arg6[%c0_13, %c0_14], %27 {strides = array<i32>} : memref<8x128xf32, #tpu.memory_space<vmem>>, vector<8x128xf32>,
    %29 = tpu.transpose %27, [1, 0] : vector<8x128xf32> -> vector<128x8xf32>
    %30 = vector.extract_strided_slice %29 {offsets = [0, 0], sizes = [24, 8], strides = [1, 1]} : vector<128x8xf32> to vector<24x8xf32>
    %31 = tpu.iota {dimensions = array<i32: 0>} : vector<24x128xi32>
    %32 = tpu.iota {dimensions = array<i32: 1>} : vector<24x128xi32>
    %33 = arith.cmpi slt, %31, %32 : vector<24x128xi32>
    %34 = tpu.iota {dimensions = array<i32: 1>} : vector<24x8xi32>
    %c0_i32_15 = arith.constant 0 : i32
    %c8_i32 = arith.constant 8 : i32
    %35 = arith.addi %c0_i32_15, %c8_i32 : i32
    %c1_i32 = arith.constant 1 : i32
    scf.for %arg8 = %c0_i32_15 to %35 step %c1_i32  : i32 {
      %c1_i32_39 = arith.constant 1 : i32
      %96 = arith.muli %arg8, %c1_i32_39 : i32
      %c0_i32_40 = arith.constant 0 : i32
      %97 = arith.addi %c0_i32_40, %96 : i32
      %98 = arith.index_cast %97 : i32 to index
      %c0_41 = arith.constant 0 : index
      %99 = vector.load %arg6[%98, %c0_41] : memref<8x128xf32, #tpu.memory_space<vmem>>, vector<1x128xf32>
      %100 = vector.shape_cast %99 : vector<1x128xf32> to vector<1x128xf32>
      %101 = vector.broadcast %100 : vector<1x128xf32> to vector<24x128xf32>
      %102 = vector.broadcast %97 : i32 to vector<24x8xi32>
      %103 = arith.cmpi eq, %34, %102 : vector<24x8xi32>
      %cst_42 = arith.constant 0.000000e+00 : f32
      %104 = vector.broadcast %cst_42 : f32 to vector<24x8xf32>
      %105 = arith.select %103, %30, %104 : vector<24x8xi1>, vector<24x8xf32>
      %cst_43 = arith.constant dense<0.000000e+00> : vector<24xf32>
      %106 = vector.multi_reduction <add>, %105, %cst_43 [1] : vector<24x8xf32> to vector<24xf32>
      %107 = vector.shape_cast %106 : vector<24xf32> to vector<24x1xf32>
      %108 = vector.shape_cast %107 : vector<24x1xf32> to vector<24x1xf32>
      %109 = vector.broadcast %108 : vector<24x1xf32> to vector<24x128xf32>
      %110 = arith.cmpf ogt, %109, %101 : vector<24x128xf32>
      %111 = arith.cmpf oeq, %109, %101 : vector<24x128xf32>
      %112 = arith.andi %111, %33 : vector<24x128xi1>
      %113 = arith.ori %110, %112 : vector<24x128xi1>
      %114 = arith.extui %113 : vector<24x128xi1> to vector<24x128xi32>
      %115 = arith.sitofp %114 : vector<24x128xi32> to vector<24x128xf32>
      %cst_44 = arith.constant dense<0.000000e+00> : vector<128xf32>
      %116 = vector.multi_reduction <add>, %115, %cst_44 [0] : vector<24x128xf32> to vector<128xf32>
      %117 = vector.shape_cast %116 : vector<128xf32> to vector<1x128xf32>
      %cst_45 = arith.constant 1.000000e+01 : f32
      %118 = vector.broadcast %cst_45 : f32 to vector<1x128xf32>
      %119 = arith.cmpf olt, %117, %118 : vector<1x128xf32>
      %120 = arith.extui %119 : vector<1x128xi1> to vector<1x128xi32>
      %121 = arith.sitofp %120 : vector<1x128xi32> to vector<1x128xf32>
      %122 = arith.index_cast %97 : i32 to index
      %c0_46 = arith.constant 0 : index
      %123 = vector.load %arg7[%122, %c0_46] : memref<8x128xf32, #tpu.memory_space<vmem>>, vector<1x128xf32>
      tpu.vector_store %arg7[%122, %c0_46], %121 {strides = array<i32>} : memref<8x128xf32, #tpu.memory_space<vmem>>, vector<1x128xf32>,
    }
    %c8_i32_16 = arith.constant 8 : i32
    %c0_17 = arith.constant 0 : index
    %c0_18 = arith.constant 0 : index
    %36 = vector.load %arg7[%c0_17, %c0_18] : memref<8x128xf32, #tpu.memory_space<vmem>>, vector<8x128xf32>
    %37 = arith.mulf %36, %13 : vector<8x128xf32>
    %cst_19 = arith.constant dense<0.000000e+00> : vector<8x8xf32>
    %38 = tpu.matmul %37, %4, %cst_19 {dimension_numbers = #tpu.dot_dimension_numbers<[1], [0], [0], [1], [0, 0, 1, 1], [], []>} : vector<8x128xf32>, vector<128x8xf32>, vector<8x8xf32> -> vector<8x8xf32>
    %cst_20 = arith.constant 0.000000e+00 : f32
    %39 = vector.broadcast %cst_20 : f32 to vector<8x8xf32>
    %40 = arith.cmpf one, %38, %39 : vector<8x8xf32>
    %41 = arith.extui %40 : vector<8x8xi1> to vector<8x8xi32>
    %42 = arith.sitofp %41 : vector<8x8xi32> to vector<8x8xf32>
    %43 = math.exp %38 : vector<8x8xf32>
    %44 = arith.mulf %43, %42 : vector<8x8xf32>
    %cst_21 = arith.constant dense<0.000000e+00> : vector<8xf32>
    %45 = vector.multi_reduction <add>, %44, %cst_21 [1] : vector<8x8xf32> to vector<8xf32>
    %46 = vector.shape_cast %45 : vector<8xf32> to vector<8x1xf32>
    %cst_22 = arith.constant 9.99999993E-9 : f32
    %47 = vector.broadcast %cst_22 : f32 to vector<8x1xf32>
    %48 = arith.addf %47, %46 : vector<8x1xf32>
    %49 = tpu.iota {dimensions = array<i32: 1>} : vector<8x8xi32>
    %50 = vector.broadcast %2 : vector<8x1xi32> to vector<8x8xi32>
    %51 = arith.cmpi eq, %49, %50 : vector<8x8xi32>
    %52 = arith.extui %51 : vector<8x8xi1> to vector<8x8xi32>
    %53 = arith.sitofp %52 : vector<8x8xi32> to vector<8x8xf32>
    %54 = arith.mulf %38, %53 : vector<8x8xf32>
    %cst_23 = arith.constant dense<0.000000e+00> : vector<8xf32>
    %55 = vector.multi_reduction <add>, %54, %cst_23 [1] : vector<8x8xf32> to vector<8xf32>
    %56 = vector.shape_cast %55 : vector<8xf32> to vector<8x1xf32>
    %cst_24 = arith.constant 0.000000e+00 : f32
    %57 = vector.broadcast %cst_24 : f32 to vector<8x1xf32>
    %58 = arith.cmpf one, %56, %57 : vector<8x1xf32>
    %59 = math.log %48 : vector<8x1xf32>
    %60 = arith.subf %59, %56 : vector<8x1xf32>
    %cst_25 = arith.constant 4.605170e+01 : f32
    %61 = vector.broadcast %cst_25 : f32 to vector<8x1xf32>
    %62 = arith.select %58, %60, %61 : vector<8x1xi1>, vector<8x1xf32>
    %63 = vector.shape_cast %62 : vector<8x1xf32> to vector<1x8x1xf32>
    %cst_26 = arith.constant dense<0.000000e+00> : vector<1xf32>
    %64 = vector.multi_reduction <add>, %63, %cst_26 [1, 2] : vector<1x8x1xf32> to vector<1xf32>
    %65 = vector.shape_cast %64 : vector<1xf32> to vector<1x1x1xf32>
    %66 = vector.extract %65[0, 0, 0] : f32 from vector<1x1x1xf32>
    %cst_27 = arith.constant 8.000000e+00 : f32
    %67 = arith.divf %66, %cst_27 : f32
    %cst_28 = arith.constant dense<0.000000e+00> : vector<32x8xf32>
    %68 = tpu.matmul %12, %4, %cst_28 {dimension_numbers = #tpu.dot_dimension_numbers<[1], [0], [0], [1], [0, 0, 1, 1], [], []>} : vector<32x128xf32>, vector<128x8xf32>, vector<32x8xf32> -> vector<32x8xf32>
    %cst_29 = arith.constant dense<0.000000e+00> : vector<128x8xf32>
    %69 = tpu.matmul %12, %68, %cst_29 {dimension_numbers = #tpu.dot_dimension_numbers<[0], [0], [1], [1], [0, 1, 1, 1], [], []>} : vector<32x128xf32>, vector<32x8xf32>, vector<128x8xf32> -> vector<128x8xf32>
    %cst_30 = arith.constant dense<0xFF800000> : vector<128xf32>
    %70 = vector.multi_reduction <maximumf>, %69, %cst_30 [1] : vector<128x8xf32> to vector<128xf32>
    %71 = vector.shape_cast %70 : vector<128xf32> to vector<128x1xf32>
    %72 = vector.broadcast %71 : vector<128x1xf32> to vector<128x8xf32>
    %73 = arith.subf %69, %72 : vector<128x8xf32>
    %74 = math.exp %73 : vector<128x8xf32>
    %cst_31 = arith.constant dense<0.000000e+00> : vector<128xf32>
    %75 = vector.multi_reduction <add>, %74, %cst_31 [1] : vector<128x8xf32> to vector<128xf32>
    %76 = vector.shape_cast %75 : vector<128xf32> to vector<128x1xf32>
    %77 = math.log %76 : vector<128x1xf32>
    %78 = arith.addf %77, %71 : vector<128x1xf32>
    %79 = arith.mulf %69, %4 : vector<128x8xf32>
    %cst_32 = arith.constant dense<0.000000e+00> : vector<128xf32>
    %80 = vector.multi_reduction <add>, %79, %cst_32 [1] : vector<128x8xf32> to vector<128xf32>
    %81 = vector.shape_cast %80 : vector<128xf32> to vector<128x1xf32>
    %82 = tpu.iota {dimensions = array<i32: 0>} : vector<128x1xi32>
    %c24_i32 = arith.constant 24 : i32
    %83 = vector.broadcast %c24_i32 : i32 to vector<128x1xi32>
    %84 = arith.cmpi slt, %82, %83 : vector<128x1xi32>
    %85 = arith.subf %78, %81 : vector<128x1xf32>
    %cst_33 = arith.constant 0.000000e+00 : f32
    %86 = vector.broadcast %cst_33 : f32 to vector<128x1xf32>
    %87 = arith.select %84, %85, %86 : vector<128x1xi1>, vector<128x1xf32>
    %88 = vector.shape_cast %87 : vector<128x1xf32> to vector<1x128x1xf32>
    %cst_34 = arith.constant dense<0.000000e+00> : vector<1xf32>
    %89 = vector.multi_reduction <add>, %88, %cst_34 [1, 2] : vector<1x128x1xf32> to vector<1xf32>
    %90 = vector.shape_cast %89 : vector<1xf32> to vector<1x1x1xf32>
    %91 = vector.extract %90[0, 0, 0] : f32 from vector<1x1x1xf32>
    %cst_35 = arith.constant 2.400000e+01 : f32
    %92 = arith.divf %91, %cst_35 : f32
    %cst_36 = arith.constant 3.000000e-01 : f32
    %93 = arith.mulf %cst_36, %92 : f32
    %94 = arith.addf %67, %93 : f32
    %c0_37 = arith.constant 0 : index
    %c0_38 = arith.constant 0 : index
    %95 = memref.load %arg5[%c0_37, %c0_38] : memref<1x1xf32, #tpu.memory_space<smem>>
    memref.store %94, %arg5[%c0_37, %c0_38] : memref<1x1xf32, #tpu.memory_space<smem>>
    return
  }
}

</mosaic_0001>

<bundles_post_ra>
// kernel: tpu_custom_call.1
= control target key start
LH: loop header
LB: loop body
LE: loop exit
PB: predicated region body
PF: predicated region fallthrough
CT: control target
= control target key end

     0   :  { %10 = vsyncpa [#allocation5], 0  ;;  %v141_v2 = vlaneseq  ;;  %v1394_v6 = vmov 0.0|0.0   ;;  %vm1395_vm0 = vmmov 0   ;;  %v1396_v10 = vmov 0.0   ;;  %s1691_s0 = inlined_call_operand.vmem [shape: f32[8,32], index: 0, kind: input, shape index: {}]   ;;  %s1692_s1 = inlined_call_operand.vmem [shape: f32[32,128], index: 1, kind: input, shape index: {}]   ;;  %s1693_s2 = inlined_call_operand.vmem [shape: s32[8,1], index: 2, kind: input, shape index: {}]   ;;  %s1694_s3 = inlined_call_operand.vmem [shape: s32[1,128], index: 3, kind: input, shape index: {}]   ;;  %s1695_s4 = inlined_call_operand.vmem [shape: f32[128,8], index: 4, kind: input, shape index: {}]   ;;  %s1696_s5 = inlined_call_operand.hbm [shape: f32[1,1], index: 5, kind: output, shape index: {}]  }
   0x1   :  { %v1433_v0 = vld [vmem:[%s1695_s4] sm:$0xff]  ;;  %v1438_v1 = vld [vmem:[%s1695_s4 + $0x8] sm:$0xff]  ;;  %v1443_v3 = vld [vmem:[%s1695_s4 + $0x10] sm:$0xff]  ;;  %1263 = vmatprep.subr.bf16.mxu0 %v1394_v6  ;;  %1155 = vmatprep.mubr.msk.f32.mxu0 %vm1395_vm0, %v1396_v10  ;;  %v1397_v13 = vmov 0   ;;  %vm1698_vm4 = vcmask 261120  }
   0x2   :  { %v1448_v4 = vld [vmem:[%s1695_s4 + $0x18] sm:$0xff]  ;;  %v1453_v5 = vld [vmem:[%s1695_s4 + $0x20] sm:$0xff]  ;;  %v1459_v7 = vld [vmem:[%s1695_s4 + $0x28] sm:$0xff]  ;;  %v1473_v11 = vshrl.u32 %v141_v2, 7  ;;  %v1475_v12 = vand.u32 127, %v141_v2  ;;  %1355 = vset.pattern.permute.xlu0 %v1397_v13 }
   0x3   :  { %v1464_v8 = vld [vmem:[%s1695_s4 + $0x30] sm:$0xff]  ;;  %v1469_v9 = vld [vmem:[%s1695_s4 + $0x38] sm:$0xff]  ;;  %v1480_v14 = vld [vmem:[%s1695_s4 + $0x40] sm:$0xff] }
   0x4   :  { %v1485_v15 = vld [vmem:[%s1695_s4 + $0x48] sm:$0xff]  ;;  %v1490_v16 = vld [vmem:[%s1695_s4 + $0x50] sm:$0xff]  ;;  %v1495_v17 = vld [vmem:[%s1695_s4 + $0x58] sm:$0xff]  ;;  %v1508_v20 = vadd.s32 8, %v1473_v11  ;;  %v1511_v21 = vadd.s32 16, %v1473_v11  ;;  %vm196_vm1 = vcmp.lt.s32.totalorder %v1473_v11, %v1475_v12  ;;  %v143_v51 = vsub.s32 0, %v1473_v11 }
   0x5   :  { %v1500_v18 = vld [vmem:[%s1695_s4 + $0x60] sm:$0xff]  ;;  %v1505_v19 = vld [vmem:[%s1695_s4 + $0x68] sm:$0xff]  ;;  %v1518_v22 = vld [vmem:[%s1695_s4 + $0x70] sm:$0xff] }
   0x6   :  { %v1523_v23 = vld [vmem:[%s1695_s4 + $0x78] sm:$0xff]  ;;  %v22_v24 = vld [vmem:[%s1692_s1] sm:$0xff]  ;;  %v23_v25 = vld [vmem:[%s1692_s1 + $0x8] sm:$0xff]  ;;  %vm197_vm2 = vcmp.lt.s32.totalorder %v1508_v20, %v1475_v12  ;;  %vm198_vm3 = vcmp.lt.s32.totalorder %v1511_v21, %v1475_v12 }
   0x7   :  { %v24_v26 = vld [vmem:[%s1692_s1 + $0x10] sm:$0xff]  ;;  %v25_v27 = vld [vmem:[%s1692_s1 + $0x18] sm:$0xff]  ;;  %v44_v28 = vmul.f32 %v22_v24, %v22_v24  ;;  %v45_v29 = vmul.f32 %v23_v25, %v23_v25  ;;  %v26_v31 = vld [vmem:[%s1693_s2] sm:$0xff] }
   0x8   :  { %v46_v30 = vmul.f32 %v24_v26, %v24_v26  ;;  %139 = vperm.xlu0 %1355, %v26_v31   ;;  %v47_v32 = vmul.f32 %v25_v27, %v25_v27  ;;  %v21_v50 = vld [vmem:[%s1691_s0] sm:$0xff]  ;;  %s1572_s0 = smov 0  }
   0x9   :  { %v48_v33 = vadd.f32 %v45_v29, %v44_v28  ;;  %v27_v52 = vld [vmem:[%s1694_s3] sm:$0x1] }
   0xa   :  { %v144_v53 = vrot.slane %v27_v52, %v143_v51  ;;  %vm137_vm5 = vcmp.ge.s32.totalorder %v27_v52, 0 }
   0xb   :  { %v49_v34 = vadd.f32 %v48_v33, %v46_v30  ;;  %v150_v55 = vsel %vm137_vm5, 1, %v1397_v13 }
   0xc   :  { %v154_v57 = vrot.slane %v150_v55, %v143_v51 }
   0xd   :  { %v50_v35 = vadd.f32 %v49_v34, %v47_v32 }
   0xe   :  { %vm155_vm7 = vcmp.eq.s32.totalorder %v154_v57, 1 }
   0xf   :  { %v51_v36 = vrot.slane %v50_v35, 4 }
  0x11   :  { %v52_v37 = vadd.f32 %v51_v36, %v50_v35 }
  0x13   :  { %v53_v38 = vrot.slane %v52_v37, 2 }
  0x15   :  { %v54_v39 = vadd.f32 %v53_v38, %v52_v37 }
  0x17   :  { %v55_v40 = vrot.slane %v54_v39, 1 }
  0x19   :  { %v56_v41 = vadd.f32 %v55_v40, %v54_v39 }
  0x1b   :  { %v57_v42 = vmax.f32 %v56_v41, 1e-24 }
  0x1d   :  { %1356 = vrsqrt.f32 %v57_v42 }
  0x27   :  { %v1357_v43 = vpop.eup %1356 }
  0x28   :  { %v1544_v44 = vmul.f32 %v1357_v43, %v22_v24  ;;  %v1546_v45 = vmul.f32 %v1357_v43, %v23_v25  ;;  %v1548_v46 = vmul.f32 %v1357_v43, %v24_v26  ;;  %v1550_v47 = vmul.f32 %v1357_v43, %v25_v27 }
  0x2a   :  { %v1264_v48 = vpack.c.bf16 %v1546_v45, %v1544_v44  ;;  %v1267_v49 = vpack.c.bf16 %v1550_v47, %v1548_v46 }
  0x2c   :  { %1265 = vmatpush3.bf16.msra.mxu0 %v1264_v48 }
  0x2d   :  { %1266 = vmatprep.subr.bf16.mxu0 %v1394_v6 }
  0x30   :  { %1268 = vmatpush3.bf16.msra.mxu0 %v1267_v49 }
  0x33   :  { %1156 = vmatmul.mubr.msk.f32.vlgmr.msra.gmra.mrb[0].mxu0 %vm1698_vm4, %v21_v50 }
  0x87   :  { %v1565_v54 = vpop.permute.xlu0 %139 }
  0x88   :  { %vm145_vm6 = vcmp.eq.s32.totalorder %v1565_v54, %v144_v53 }
  0x89   :  { %v1061_v56 = vsel %vm145_vm6, 1.0, %v1396_v10 }
  0x8a   :  { %v148_v58 = vmul.f32 100.0, %v1061_v56 }
 0x106   :  { %v1569_v59 = vpop.f32.mrb[0].mxu0 }
 0x107   :  { %v149_v60 = vadd.f32 %v148_v58, %v1569_v59  ;;  %v1157_v61 = vpop.f32.mrb[1].mxu0 }
 0x109   :  { %v156_v62 = vsel %vm155_vm7, %v149_v60, -1e+30 }
 0x10a   :  { %158 = vxpose.xlu0.b32.start.end [1/1] (short) (narrow) %v156_v62, 24  ;;  %157 = vst [vmem:[#allocation2] sm:$0xff] %v156_v62 }
 0x18a   :  { %v174_v63 = vpop.trf.xlu0 }
 0x18e   :  { %v175_v2 = vpop.trf.xlu0 }
 0x192   :  { %v176_v24 = vpop.trf.xlu0 }
 0x193 LB: > { %v211_v13 = vstv %s1392_s0  ;;  %vm1697_vm8 = vcmask 64512   ;;  %s205_s3 = scalar_lea.vmem [#allocation2], %s1392_s0  ;;  %v1398_v35 = vmov 0.0   ;;  %s255_s11 = scalar_lea.vmem [#allocation3], %s1392_s0  ;;  %s1392_s0 = sphi %s1572_s0, %s204_s0  }
 0x194   : > { %vm212_vm9 = vcmp.eq.s32.totalorder %v1475_v12, %v211_v13  ;;  %v1062_v31 = vld [vmem:[%s205_s3] ss:$0 sm:$0xff]  ;;  %s204_s0 = sadd.s32 1, %s1392_s0  }
 0x195   : > { %v213_v25 = vsel %vm212_vm9, %v174_v63, 0.0  ;;  %v214_v26 = vsel %vm212_vm9, %v175_v2, 0.0  ;;  %v215_v27 = vsel %vm212_vm9, %v176_v24, 0.0  ;;  %p201_p0 = scmp.ge.s32.totalorder %s204_s0, 8  }
 0x196   : > { %v217_v28 = vsel %vm1697_vm8, %v213_v25, 0.0  ;;  %v223_v29 = vsel %vm1697_vm8, %v215_v27, 0.0  ;;  %v220_v30 = vsel %vm1697_vm8, %v214_v26, 0.0  ;;  %v1270_v52 = vpack.c.bf16 (%p201_p0), %v1438_v1, %v1433_v0  ;;  %1225 = vmatprep.mubr.f32.mxu0 (%p201_p0), %v1544_v44  ;;  %1269 = vmatprep.subr.bf16.mxu1 (%p201_p0), %v1394_v6  ;;  %s1374_s20 = scalar_lea.hbm (%p201_p0), %s1696_s5, 16 }
 0x197   : > { %218 = vadd.xlane.f32.xlu0 %v217_v28  ;;  %224 = vadd.xlane.f32.xlu1 %v223_v29  ;;  %v1273_v53 = vpack.c.bf16 (%p201_p0), %v1448_v4, %v1443_v3  ;;  %v1276_v55 = vpack.c.bf16 (%p201_p0), %v1459_v7, %v1453_v5  ;;  %v1279_v4 = vpack.c.bf16 (%p201_p0), %v1469_v9, %v1464_v8  ;;  %p1375_p1 = scmp.ne.s32.totalorder (%p201_p0), %s1696_s5, %s1374_s20  ;;  %p1378_p2 = scmp.lt.u32.totalorder (%p201_p0), %s1374_s20, %s1696_s5 }
 0x198   :  { %1294 = vmatprep.subr.bf16.mxu0 (%p201_p0), %v1270_v52  ;;  %1271 = vmatpush3.bf16.msra.mxu1 (%p201_p0), %v1270_v52  ;;  %v1282_v5 = vpack.c.bf16 (%p201_p0), %v1485_v15, %v1480_v14  ;;  %v1285_v7 = vpack.c.bf16 (%p201_p0), %v1495_v17, %v1490_v16  ;;  %v1288_v8 = vpack.c.bf16 (%p201_p0), %v1505_v19, %v1500_v18 }
 0x199   :  { %1296 = vmatpush3.bf16.msra.mxu0 (%p201_p0), %v1270_v52  ;;  %1272 = vmatprep.subr.bf16.mxu1 (%p201_p0), %v1394_v6  ;;  %v1291_v9 = vpack.c.bf16 (%p201_p0), %v1523_v23, %v1518_v22  ;;  %p1380_p3 = pnand (%p201_p0), %p1378_p2, %p1375_p1 }
 0x19a   :  { %1298 = vmatprep.subr.bf16.mxu0 (%p201_p0), %v1273_v53  ;;  %1190 = vmatprep.mubr.msk.f32.mxu1 (%p201_p0), %vm1395_vm0, %v1396_v10  ;;  %vm1699_vm0 = vcmask (%p201_p0), 261120  }
 0x19b   : > { %221 = vadd.xlane.f32.xlu0 %v220_v30 }
 0x19c   :  { %1274 = vmatpush3.bf16.msra.mxu1 (%p201_p0), %v1273_v53 }
 0x19d   :  { %1300 = vmatpush3.bf16.msra.mxu0 (%p201_p0), %v1273_v53  ;;  %1275 = vmatprep.subr.bf16.mxu1 (%p201_p0), %v1394_v6 }
 0x19e   :  { %1302 = vmatprep.subr.bf16.mxu0 (%p201_p0), %v1276_v55 }
 0x1a0   :  { %1277 = vmatpush3.bf16.msra.mxu1 (%p201_p0), %v1276_v55 }
 0x1a1   :  { %1304 = vmatpush3.bf16.msra.mxu0 (%p201_p0), %v1276_v55  ;;  %1278 = vmatprep.subr.bf16.mxu1 (%p201_p0), %v1394_v6 }
 0x1a2   :  { %1306 = vmatprep.subr.bf16.mxu0 (%p201_p0), %v1279_v4 }
 0x1a4   :  { %1280 = vmatpush3.bf16.msra.mxu1 (%p201_p0), %v1279_v4 }
 0x1a5   :  { %1308 = vmatpush3.bf16.msra.mxu0 (%p201_p0), %v1279_v4  ;;  %1281 = vmatprep.subr.bf16.mxu1 (%p201_p0), %v1394_v6 }
 0x1a6   :  { %1310 = vmatprep.subr.bf16.mxu0 (%p201_p0), %v1282_v5 }
 0x1a8   :  { %1283 = vmatpush3.bf16.msra.mxu1 (%p201_p0), %v1282_v5 }
 0x1a9   :  { %1312 = vmatpush3.bf16.msra.mxu0 (%p201_p0), %v1282_v5  ;;  %1284 = vmatprep.subr.bf16.mxu1 (%p201_p0), %v1394_v6 }
 0x1aa   :  { %1314 = vmatprep.subr.bf16.mxu0 (%p201_p0), %v1285_v7 }
 0x1ac   :  { %1286 = vmatpush3.bf16.msra.mxu1 (%p201_p0), %v1285_v7 }
 0x1ad   :  { %1316 = vmatpush3.bf16.msra.mxu0 (%p201_p0), %v1285_v7  ;;  %1287 = vmatprep.subr.bf16.mxu1 (%p201_p0), %v1394_v6 }
 0x1ae   :  { %1318 = vmatprep.subr.bf16.mxu0 (%p201_p0), %v1288_v8 }
 0x1b0   :  { %1289 = vmatpush3.bf16.msra.mxu1 (%p201_p0), %v1288_v8 }
 0x1b1   :  { %1320 = vmatpush3.bf16.msra.mxu0 (%p201_p0), %v1288_v8  ;;  %1290 = vmatprep.subr.bf16.mxu1 (%p201_p0), %v1394_v6 }
 0x1b2   :  { %1322 = vmatprep.subr.bf16.mxu0 (%p201_p0), %v1291_v9 }
 0x1b4   :  { %1292 = vmatpush3.bf16.msra.mxu1 (%p201_p0), %v1291_v9 }
 0x1b5   :  { %1324 = vmatpush3.bf16.msra.mxu0 (%p201_p0), %v1291_v9 }
 0x1b8   :  { %1226 = vmatmul.mubr.f32.vlgmr.msra.gmra.mrb[2].mxu0 (%p201_p0), %v1546_v45 }
 0x1b9   :  { %1228 = vmatprep.mubr.f32.mxu0 (%p201_p0), %v1548_v46 }
 0x1bc   :  { %1229 = vmatmul.mubr.f32.gmra.mrb[4].mxu0 (%p201_p0), %v1550_v47 }
 0x1c8   :  { %451 = vxpose.xlu0.b32.start [1/4] (short) (%p201_p0), %v1544_v44, 128 }
 0x1cc   :  { %452 = vxpose.xlu0.b32.cont [2/4] (short) (%p201_p0), %v1546_v45, 128 }
 0x1d0   :  { %453 = vxpose.xlu0.b32.cont [3/4] (short) (%p201_p0), %v1548_v46, 128 }
 0x1d4   :  { %454 = vxpose.xlu0.b32.end [4/4] (short) (%p201_p0), %v1550_v47, 128 }
 0x224   : > { %v219_v32 = vpop.xlane.xlu0 %218  ;;  %v225_v33 = vpop.xlane.xlu1 %224 }
 0x225   : > { %vm226_vm10 = vcmp.gt.f32.partialorder %v219_v32, %v1062_v31  ;;  %vm229_vm11 = vcmp.eq.f32.partialorder %v219_v32, %v1062_v31  ;;  %vm231_vm12 = vcmp.eq.f32.partialorder %v225_v33, %v1062_v31  ;;  %vm228_vm14 = vcmp.gt.f32.partialorder %v225_v33, %v1062_v31 }
 0x226   : > { %vm232_vm13 = vmand %vm229_vm11, %vm196_vm1 }
 0x227   : > { %vm235_vm15 = vmor %vm226_vm10, %vm232_vm13 }
 0x228   : > { %v222_v34 = vpop.xlane.xlu0 %221  ;;  %vm234_vm5 = vmand %vm231_vm12, %vm198_vm3  ;;  %v1063_v36 = vsel %vm235_vm15, 1.0, %v1398_v35 }
 0x229   : > { %vm227_vm6 = vcmp.gt.f32.partialorder %v222_v34, %v1062_v31  ;;  %vm230_vm7 = vcmp.eq.f32.partialorder %v222_v34, %v1062_v31  ;;  %vm237_vm9 = vmor %vm228_vm14, %vm234_vm5 }
 0x22a   : > { %vm233_vm8 = vmand %vm230_vm7, %vm197_vm2  ;;  %v1065_v38 = vsel %vm237_vm9, 1.0, %v1398_v35 }
 0x22b   : > { %vm236_vm4 = vmor %vm227_vm6, %vm233_vm8 }
 0x22c   : > { %v1064_v37 = vsel %vm236_vm4, 1.0, %v1398_v35  ;;  %vm1700_vm1 = vmmov (%p201_p0), %vm1699_vm0  ;;  %vm1703_vm4 = vcmask (%p201_p0), 64512  }
 0x22d   : > { %v244_v39 = vadd.f32 %v1064_v37, %v1063_v36  ;;  %vm1701_vm2 = vmmov (%p201_p0), %vm1699_vm0 }
 0x22e   :  { %vm1702_vm3 = vmmov (%p201_p0), %vm1699_vm0 }
 0x22f   : > { %v245_v40 = vadd.f32 %v1065_v38, %v244_v39  ;;  %vm1704_vm8 = vmmov (%p201_p0), %vm1703_vm4 }
 0x230   :  { %vm1705_vm11 = vmmov (%p201_p0), %vm1703_vm4 }
 0x231   : > { %v246_v41 = vrot.slane %v245_v40, 4  ;;  %vm1706_vm13 = vmmov (%p201_p0), %vm1703_vm4 }
 0x232   :  { %vm1707_vm14 = vmmov (%p201_p0), %vm1699_vm0 }
 0x233   : > { %v247_v42 = vadd.f32 %v246_v41, %v245_v40  ;;  %vm1708_vm15 = vmmov (%p201_p0), %vm1699_vm0 }
 0x234   :  { %vm1709_vm5 = vmmov (%p201_p0), %vm1699_vm0 }
 0x235   : > { %v248_v43 = vrot.slane %v247_v42, 2  ;;  %vm1710_vm6 = vmmov (%p201_p0), %vm1699_vm0 }
 0x236   :  { %vm1711_vm7 = vmmov (%p201_p0), %vm1699_vm0 }
 0x237   : > { %v249_v48 = vadd.f32 %v248_v43, %v247_v42  ;;  %vm1712_vm9 = vmmov (%p201_p0), %vm1699_vm0 }
 0x239   : > { %v250_v49 = vrot.slane %v249_v48, 1  ;;  %203 = sbr.rel (!%p201_p0) target bundleno = 403 (0x193), region = 50 }
 0x23b   : > { %v251_v50 = vadd.f32 %v250_v49, %v249_v48 }
 0x23d   : > { %vm252_vm10 = vcmp.lt.f32.partialorder %v251_v50, 10.0 }
 0x23e   : > { %v1066_v51 = vsel %vm252_vm10, 1.0, %v1398_v35  ;;  %vm1713_vm10 = vmmov (%p201_p0), %vm1699_vm0 }
 0x23f   : > { %256 = vst [vmem:[%s255_s11] sm:$0x1] %v1066_v51 }
 0x246   :  { %v257_v11 = vld [vmem:[#allocation3] sm:$0xff] }
 0x247   :  { %v258_v14 = vmul.f32 %v257_v11, %v1569_v59 }
 0x248   :  { %v467_v15 = vpop.trf.xlu0 }
 0x249   :  { %1191 = vmatmul.mubr.f32.vlgmr.msra.gmra.mrb[0].mxu1 %v258_v14  ;;  %1239 = vmatprep.mubr.msk.f32.mxu0 %vm1699_vm0, %v467_v15 }
 0x24c   :  { %v468_v18 = vpop.trf.xlu0 }
 0x250   :  { %v469_v22 = vpop.trf.xlu0 }
 0x254   :  { %v470_v23 = vpop.trf.xlu0 }
 0x258   :  { %v471_v13 = vpop.trf.xlu0 }
 0x25c   :  { %v472_v25 = vpop.trf.xlu0 }
 0x260   :  { %v473_v26 = vpop.trf.xlu0 }
 0x261   :  { %1248 = vmatprep.mubr.msk.f32.mxu1 %vm1709_vm5, %v473_v26  ;;  %vm1722_vm5 = vmmov %vm1704_vm8 }
 0x264   :  { %v474_v27 = vpop.trf.xlu0 }
 0x268   :  { %v475_v28 = vpop.trf.xlu0 }
 0x26c   :  { %v476_v29 = vpop.trf.xlu0 }
 0x270   :  { %v477_v30 = vpop.trf.xlu0 }
 0x274   :  { %v478_v31 = vpop.trf.xlu0 }
 0x278   :  { %v479_v32 = vpop.trf.xlu0 }
 0x27c   :  { %v480_v33 = vpop.trf.xlu0 }
 0x280   :  { %v481_v34 = vpop.trf.xlu0 }
 0x284   :  { %v482_v35 = vpop.trf.xlu0 }
 0x28b   :  { %v1227_v16 = vpop.f32.mrb[2].mxu0 }
 0x28c   :  { %v432_v17 = vpop.f32.mrb[3].mxu0 }
 0x28d   :  { %v1325_v19 = vpack.c.bf16 %v1227_v16, %v432_v17 }
 0x28f   :  { %v1230_v6 = vpop.f32.mrb[4].mxu0  ;;  %1326 = vmatprep.subr.bf16.mxu0 %v1325_v19  ;;  %1333 = vmatprep.subr.bf16.mxu1 %v1325_v19 }
 0x290   :  { %v442_v20 = vpop.f32.mrb[5].mxu0  ;;  %1328 = vmatpush3.bf16.msra.mxu0 %v1325_v19  ;;  %1335 = vmatpush3.bf16.msra.mxu1 %v1325_v19 }
 0x291   :  { %v1329_v21 = vpack.c.bf16 %v1230_v6, %v442_v20 }
 0x293   :  { %1330 = vmatprep.subr.bf16.mxu0 %v1329_v21  ;;  %1334 = vmatprep.subr.bf16.mxu1 %v1329_v21 }
 0x294   :  { %1332 = vmatpush3.bf16.msra.mxu0 %v1329_v21  ;;  %1336 = vmatpush3.bf16.msra.mxu1 %v1329_v21 }
 0x297   :  { %1240 = vmatmul.mubr.msk.f32.vlgmr.msra.gmra.mrb[6].mxu0 %vm1700_vm1, %v468_v18  ;;  %1249 = vmatmul.mubr.msk.f32.vlgmr.msra.gmra.mrb[2].mxu1 %vm1710_vm6, %v474_v27  ;;  %vm1714_vm1 = vmmov %vm1699_vm0 }
 0x298   :  { %1242 = vmatprep.mubr.msk.f32.mxu0 %vm1701_vm2, %v469_v22  ;;  %1251 = vmatprep.mubr.msk.f32.mxu1 %vm1711_vm7, %v475_v28  ;;  %vm1715_vm2 = vmmov %vm1699_vm0  ;;  %vm352_vm7 = vcmask 7168  }
 0x299   :  { %vm1723_vm6 = vmmov %vm1722_vm5 }
 0x29b   :  { %1243 = vmatmul.mubr.msk.f32.gmra.mrb[8].mxu0 %vm1702_vm3, %v470_v23  ;;  %1252 = vmatmul.mubr.msk.f32.gmra.mrb[4].mxu1 %vm1712_vm9, %v476_v29  ;;  %vm1716_vm3 = vmmov %vm1699_vm0 }
 0x29c   :  { %1245 = vmatprep.mubr.msk.f32.mxu0 %vm1707_vm14, %v471_v13  ;;  %1254 = vmatprep.mubr.msk.f32.mxu1 %vm1713_vm10, %v477_v30  ;;  %vm340_vm14 = vcmp.eq.s32.totalorder %v1475_v12, %v1565_v54 }
 0x29d   :  { %v1068_v11 = vsel %vm340_vm14, 1.0, %v1396_v10 }
 0x29f   :  { %1246 = vmatmul.mubr.msk.f32.gmra.mrb[10].mxu0 %vm1708_vm15, %v472_v25  ;;  %1255 = vmatmul.mubr.msk.f32.gmra.mrb[6].mxu1 %vm1699_vm0, %v478_v31  ;;  %vm1721_vm15 = vmmov %vm1704_vm8 }
 0x2a0   :  { %1257 = vmatprep.mubr.msk.f32.mxu1 %vm1714_vm1, %v479_v32 }
 0x2a3   :  { %1258 = vmatmul.mubr.msk.f32.gmra.mrb[8].mxu1 %vm1715_vm2, %v480_v33 }
 0x2a4   :  { %1260 = vmatprep.mubr.msk.f32.mxu1 %vm1716_vm3, %v481_v34 }
 0x31c   :  { %v1635_v44 = vpop.f32.mrb[0].mxu1 }
 0x31d   :  { %v1192_v45 = vpop.f32.mrb[1].mxu1  ;;  %v332_v57 = vmul.f32 1.442695, %v1635_v44  ;;  %vm329_vm12 = vcmp.ne.f32.partialorder %v1635_v44, 0.0 }
 0x31e   :  { %v1067_v63 = vsel %vm329_vm12, 1.0, %v1396_v10  ;;  %vm1719_vm12 = vmmov %vm1704_vm8 }
 0x31f   :  { %1358 = vpow2.f32 %v332_v57 }
 0x329   :  { %v1359_v62 = vpop.eup %1358 }
 0x32a   :  { %v334_v2 = vmul.f32 %v1359_v62, %v1067_v63 }
 0x32c   :  { %v336_v24 = vsel %vm1706_vm13, %v334_v2, 0.0  ;;  %vm1720_vm13 = vmmov %vm1704_vm8 }
 0x36a   :  { %v1637_v46 = vpop.f32.mrb[6].mxu0  ;;  %v1250_v17 = vpop.f32.mrb[2].mxu1 }
 0x36b   :  { %v597_v47 = vpop.f32.mrb[7].mxu0  ;;  %v679_v56 = vsel %vm1703_vm4, %v1637_v46, -inf  ;;  %vm1717_vm4 = vmmov %vm1699_vm0  ;;  %v869_v7 = vmul.f32 %v1637_v46, %v1438_v1  ;;  %v627_v18 = vpop.f32.mrb[3].mxu1 }
 0x36c   :  { %680 = vmax.xlane.f32.xlu1 %v679_v56  ;;  %v676_v59 = vsel %vm1704_vm8, %v597_v47, -inf  ;;  %1261 = vmatmul.mubr.msk.f32.gmra.mrb[10].mxu1 %vm1717_vm4, %v482_v35  ;;  %v868_v4 = vmul.f32 %v597_v47, %v1433_v0  ;;  %v343_v0 = vmul.f32 %v1068_v11, %v1635_v44 }
 0x36d   :  { %v887_v8 = vsel %vm1721_vm15, %v869_v7, 0.0 }
 0x36e   :  { %v1244_v58 = vpop.f32.mrb[8].mxu0  ;;  %v884_v5 = vsel %vm1720_vm13, %v868_v4, 0.0  ;;  %v344_v15 = vsel %vm1723_vm6, %v343_v0, 0.0  ;;  %v1253_v12 = vpop.f32.mrb[4].mxu1 }
 0x36f   :  { %v607_v60 = vpop.f32.mrb[9].mxu0  ;;  %v637_v54 = vpop.f32.mrb[5].mxu1 }
 0x370   :  { %677 = vmax.xlane.f32.xlu1 %v676_v59  ;;  %v682_v61 = vsel %vm1705_vm11, %v607_v60, -inf  ;;  %vm1718_vm11 = vmmov %vm1704_vm8  ;;  %v870_v9 = vmul.f32 %v607_v60, %v1443_v3 }
 0x372   :  { %v890_v14 = vsel %vm1722_vm5, %v870_v9, 0.0  ;;  %v1247_v1 = vpop.f32.mrb[10].mxu0  ;;  %v1256_v19 = vpop.f32.mrb[6].mxu1 }
 0x373   :  { %v617_v16 = vpop.f32.mrb[11].mxu0  ;;  %v647_v6 = vpop.f32.mrb[7].mxu1 }
 0x374   :  { %683 = vmax.xlane.f32.xlu1 %v682_v61 }
 0x376   :  { %v1259_v10 = vpop.f32.mrb[8].mxu1 }
 0x377   :  { %v657_v22 = vpop.f32.mrb[9].mxu1 }
 0x378   :  { %337 = vadd.xlane.f32.xlu1 %v336_v24 }
 0x3f9   :  { %v1659_v36 = vpop.xlane.xlu1 %680 }
 0x3fa   :  { %v725_v37 = vsub.f32 %v1637_v46, %v1659_v36 }
 0x3fc   :  { %v742_v38 = vmul.f32 1.442695, %v725_v37 }
 0x3fd   :  { %v678_v39 = vpop.xlane.xlu1 %677 }
 0x3fe   :  { %1360 = vpow2.f32 %v742_v38  ;;  %v724_v40 = vsub.f32 %v597_v47, %v678_v39 }
 0x400   :  { %v740_v41 = vmul.f32 1.442695, %v724_v40 }
 0x401   :  { %v684_v42 = vpop.xlane.xlu1 %683 }
 0x402   :  { %1362 = vpow2.f32 %v740_v41  ;;  %v726_v43 = vsub.f32 %v607_v60, %v684_v42 }
 0x404   :  { %v744_v48 = vmul.f32 1.442695, %v726_v43 }
 0x405   :  { %v338_v3 = vpop.xlane.xlu1 %337 }
 0x406   :  { %1364 = vpow2.f32 %v744_v48  ;;  %v339_v23 = vadd.f32 1e-08, %v338_v3 }
 0x408   :  { %v1361_v49 = vpop.eup %1360 }
 0x409   :  { %v775_v50 = vsel %vm1704_vm8, %v1361_v49, 0.0 }
 0x40a   :  { %776 = vadd.xlane.f32.xlu0 %v775_v50 }
 0x40c   :  { %v1363_v51 = vpop.eup %1362 }
 0x40d   :  { %v772_v52 = vsel %vm1718_vm11, %v1363_v51, 0.0 }
 0x40e   :  { %773 = vadd.xlane.f32.xlu1 %v772_v52 }
 0x410   :  { %v1365_v53 = vpop.eup %1364 }
 0x411   :  { %v778_v55 = vsel %vm1719_vm12, %v1365_v53, 0.0 }
 0x412   :  { %779 = vadd.xlane.f32.xlu1 %v778_v55 }
 0x416   :  { %885 = vadd.xlane.f32.xlu1 %v884_v5 }
 0x41a   :  { %888 = vadd.xlane.f32.xlu1 %v887_v8 }
 0x41e   :  { %891 = vadd.xlane.f32.xlu1 %v890_v14 }
 0x422   :  { %345 = vadd.xlane.f32.xlu1 %v344_v15 }
 0x43f   :  { %v1262_v45 = vpop.f32.mrb[10].mxu1 }
 0x440   :  { %v667_v47 = vpop.f32.mrb[11].mxu1 }
 0x497   :  { %v777_v20 = vpop.xlane.xlu0 %776 }
 0x498   :  { %1366 = vlog2.f32 %v777_v20 }
 0x49b   :  { %v774_v21 = vpop.xlane.xlu1 %773 }
 0x49c   :  { %1368 = vlog2.f32 %v774_v21 }
 0x49f   :  { %v780_v44 = vpop.xlane.xlu1 %779 }
 0x4a0   :  { %1370 = vlog2.f32 %v780_v44 }
 0x4a1   :  { %1372 = vlog2.f32 %v339_v23 }
 0x4a2   :  { %v1367_v56 = vpop.eup %1366 }
 0x4a3   :  { %v886_v46 = vpop.xlane.xlu1 %885  ;;  %v823_v58 = vmul.f32 0.6931472, %v1367_v56 }
 0x4a5   :  { %v853_v24 = vadd.f32 %v823_v58, %v1659_v36 }
 0x4a6   :  { %v1369_v57 = vpop.eup %1368 }
 0x4a7   :  { %v821_v59 = vmul.f32 0.6931472, %v1369_v57  ;;  %v889_v60 = vpop.xlane.xlu1 %888 }
 0x4a8   :  { %v962_v28 = vsub.f32 %v853_v24, %v889_v60 }
 0x4a9   :  { %v852_v61 = vadd.f32 %v821_v59, %v678_v39 }
 0x4aa   :  { %v1371_v62 = vpop.eup %1370  ;;  %v994_v34 = vsel %vm352_vm7, %v962_v28, 0.0 }
 0x4ab   :  { %v1373_v63 = vpop.eup %1372  ;;  %v825_v2 = vmul.f32 0.6931472, %v1371_v62  ;;  %v892_v13 = vpop.xlane.xlu1 %891  ;;  %v961_v25 = vsub.f32 %v852_v61, %v886_v46 }
 0x4ac   :  { %v349_v27 = vmul.f32 0.6931472, %v1373_v63 }
 0x4ad   :  { %v854_v26 = vadd.f32 %v825_v2, %v684_v42  ;;  %v993_v32 = vsel %vm352_vm7, %v961_v25, 0.0 }
 0x4ae   :  { %v995_v38 = vadd.f32 %v994_v34, %v993_v32 }
 0x4af   :  { %v963_v29 = vsub.f32 %v854_v26, %v892_v13  ;;  %v346_v30 = vpop.xlane.xlu1 %345 }
 0x4b0   :  { %vm347_vm9 = vcmp.ne.f32.partialorder %v346_v30, 0.0  ;;  %v350_v31 = vsub.f32 %v349_v27, %v346_v30 }
 0x4b1   :  { %v996_v37 = vsel %vm352_vm7, %v963_v29, 0.0 }
 0x4b2   :  { %v351_v33 = vsel %vm347_vm9, %v350_v31, 46.0517  ;;  %v997_v39 = vadd.f32 %v996_v37, %v995_v38 }
 0x4b3   :  { %v353_v35 = vsel %vm352_vm7, %v351_v33, 0.0 }
 0x4b4   :  { %354 = vadd.xlane.f32.xlu1 %v353_v35 }
 0x4b8   :  { %1024 = vadd.xlane.f32.xlu1 %v997_v39 }
 0x541   :  { %v355_v36 = vpop.xlane.xlu1 %354 }
 0x542   :  { %v356_v40 = vrot.slane %v355_v36, 4 }
 0x544   :  { %v357_v41 = vadd.f32 %v356_v40, %v355_v36 }
 0x545   :  { %v1025_v42 = vpop.xlane.xlu1 %1024 }
 0x546   :  { %v358_v43 = vrot.slane %v357_v41, 2  ;;  %v1026_v48 = vrot.slane %v1025_v42, 4 }
 0x548   :  { %v1027_v49 = vadd.f32 %v1026_v48, %v1025_v42  ;;  %v359_v50 = vadd.f32 %v358_v43, %v357_v41 }
 0x54a   :  { %v1028_v51 = vrot.slane %v1027_v49, 2  ;;  %v360_v52 = vrot.slane %v359_v50, 1 }
 0x54c   :  { %v1029_v53 = vadd.f32 %v1028_v51, %v1027_v49  ;;  %v361_v55 = vadd.f32 %v360_v52, %v359_v50 }
 0x54e   :  { %1337 = vpush %v361_v55  ;;  %v1030_v4 = vrot.slane %v1029_v53, 1 }
 0x550   :  { %v1031_v5 = vadd.f32 %v1030_v4, %v1029_v53 }
 0x552   :  { %1339 = vpush %v1031_v5 }
 0x57f   :  { %s1338_s12 = spop %1337 }
 0x580   :  { %s365_s15 = smul.f32 0.125, %s1338_s12 }
 0x583   :  { %s1340_s13 = spop %1339 }
 0x584   :  { %s1035_s14 = smul.f32 0.041666668, %s1340_s13 }
 0x586   :  { %s1036_s16 = smul.f32 0.3, %s1035_s14 }
 0x588   :  { %s1037_s17 = sadd.f32 %s1036_s16, %s365_s15 }
 0x58a   :  { %1039 = sst [smem:[#allocation4]] %s1037_s17 }
 0x58b   :  { %1383 = shalt.err (!%p1380_p3)
}
 0x58c   :  { %s1399_s25 = smov [#allocation4]  }
 0x58d   :  { %1047 = dma.smem_to_hbm %s1399_s25, 16, %s1696_s5, [#allocation5]  }
 0x58e   :  { %1388 = dma.done.wait [#allocation5], 16  }
 0x58f   :  { %1389 = vsyncadd [#allocation5], 4294967280 }
 0x590   :  { %1051 = sfence }
 0x591   :  { %1052 = vsyncpa [#allocation5], 1 }

</bundles_post_ra>
